<compile_context>
chip_gen: v5e
topology: v5e:2x2
jax: 0.10.0
libtpu: 0.0.40
codegen_flags: <defaults>
</compile_context>

<pallas_src>
import math

import jax
import jax.numpy as jnp
from jax import lax
from jax.experimental import pallas as pl
from jax.experimental.pallas import tpu as pltpu


# ----------------------------- config (small) --------------------------------
class Cfg:
    n_embd = 32
    n_head = 4
    block_size = 8      # sequence length T
    lora_rank = 4


# --------------------------------- kernel -------------------------------------
def make_attention_kernel(B, T, C, n_head, C_pad):
    hd = C // n_head
    N = B * T

    def kernel(x_ref, wq_ref, wk_ref, wv_ref, bq_ref, bk_ref, bv_ref,
               wp_ref, bp_ref, o_ref, y_scratch):
        x2d = x_ref[...]                                         # (B*T, C)

        # additive causal bias, computed once for all heads / batch rows
        row = lax.broadcasted_iota(jnp.int32, (T, T), 0)
        col = lax.broadcasted_iota(jnp.int32, (T, T), 1)
        causal_bias = jnp.where(row >= col,
                                jnp.float32(0.0),
                                jnp.float32(-1e30))[None]        # (1, T, T)

        for h in range(n_head):                                  # static unroll
            # per-head projections (weights pre-split per head; q pre-scaled)
            qh = (jnp.dot(x2d, wq_ref[h], preferred_element_type=jnp.float32)
                  + bq_ref[h]).reshape(B, T, hd)
            kh = (jnp.dot(x2d, wk_ref[h], preferred_element_type=jnp.float32)
                  + bk_ref[h]).reshape(B, T, hd)
            vh = (jnp.dot(x2d, wv_ref[h], preferred_element_type=jnp.float32)
                  + bv_ref[h]).reshape(B, T, hd)

            # batched-over-B scores + masked softmax
            s = jnp.einsum('bqd,bkd->bqk', qh, kh,
                           preferred_element_type=jnp.float32) + causal_bias
            s = s - jnp.max(s, axis=-1, keepdims=True)
            p = jnp.exp(s)
            p = p * pl.reciprocal(jnp.sum(p, axis=-1, keepdims=True),
                                  approx=True)
            yh = jnp.einsum('bqk,bkd->bqd', p, vh,
                            preferred_element_type=jnp.float32)  # (B, T, hd)

            # static column slice into VMEM scratch (replaces concatenate)
            y_scratch[:, h * hd:(h + 1) * hd] = yh.reshape(N, hd)

        # c_proj on the assembled (B*T, C) scratch; output is lane-dense (C_pad=128)
        out = jnp.dot(y_scratch[...], wp_ref[...],
                      preferred_element_type=jnp.float32) + bp_ref[0]
        o_ref[...] = out.astype(o_ref.dtype)                     # (N, C_pad)

    return kernel


# --------------------------------- wrapper -------------------------------------
def attention_forward(x, w_attn, b_attn, w_proj, b_proj, *, n_head):
    """x: (B, T, C) f32; w_attn: (C, 3C) [in,out]; b_attn: (3C,);
    w_proj: (C, C) [in,out]; b_proj: (C,).  Returns (B, T, C)."""
    B, T, C = x.shape
    hd = C // n_head
    scale = 1.0 / math.sqrt(hd)
    LANES = 128
    C_pad = max(C, LANES)

    # split fused qkv weight / bias and regroup per head: (H, C, hd) / (H, 1, hd)
    w_q, w_k, w_v = jnp.split(w_attn, 3, axis=1)                 # (C, C) each
    b_q, b_k, b_v = jnp.split(b_attn.reshape(-1), 3)             # (C,) each

    def w_heads(w):                                              # (C,C)->(H,C,hd)
        return jnp.transpose(w.reshape(C, n_head, hd), (1, 0, 2))

    def b_heads(b):                                              # (C,)->(H,1,hd)
        return b.reshape(n_head, 1, hd)

    wq_h = w_heads(w_q) * scale          # fold 1/sqrt(hd) into the q projection
    wk_h = w_heads(w_k)
    wv_h = w_heads(w_v)
    bq_h = b_heads(b_q) * scale
    bk_h = b_heads(b_k)
    bv_h = b_heads(b_v)

    # pad c_proj output columns to a lane-dense width (unmasked vst epilogue)
    w_proj_p = jnp.pad(w_proj, ((0, 0), (0, C_pad - C)))
    b_proj_p = jnp.pad(b_proj.reshape(1, C), ((0, 0), (0, C_pad - C)))

    x2d = x.reshape(B * T, C)

    kernel = make_attention_kernel(B, T, C, n_head, C_pad)
    vmem = pltpu.MemorySpace.VMEM
    out_p = pl.pallas_call(
        kernel,
        out_shape=jax.ShapeDtypeStruct((B * T, C_pad), x.dtype),
        in_specs=[pl.BlockSpec(memory_space=vmem)] * 9,
        out_specs=pl.BlockSpec(memory_space=vmem),
        scratch_shapes=[pltpu.VMEM((B * T, C), jnp.float32)],
    )(x2d, wq_h, wk_h, wv_h, bq_h, bk_h, bv_h, w_proj_p, b_proj_p)

    return out_p[:, :C].reshape(B, T, C)


# ------------------------- pure-JAX reference ---------------------------------
def attention_reference(x, w_attn, b_attn, w_proj, b_proj, *, n_head):
    B, T, C = x.shape
    hd = C // n_head
    qkv = x @ w_attn + b_attn                                    # (B, T, 3C)
    q, k, v = jnp.split(qkv, 3, axis=-1)

    def to_heads(t):                                             # (B, nh, T, hd)
        return t.reshape(B, T, n_head, hd).transpose(0, 2, 1, 3)

    q, k, v = to_heads(q), to_heads(k), to_heads(v)
    att = (q @ k.transpose(0, 1, 3, 2)) * (1.0 / math.sqrt(hd))
    mask = jnp.tril(jnp.ones((T, T), dtype=bool))
    att = jnp.where(mask[None, None], att, -jnp.inf)
    att = jax.nn.softmax(att, axis=-1)
    y = (att @ v).transpose(0, 2, 1, 3).reshape(B, T, C)
    return y @ w_proj + b_proj


# --------------------------------- main ---------------------------------------
if __name__ == "__main__":
    cfg = Cfg()
    B, T, C = 2, cfg.block_size, cfg.n_embd
    r = cfg.lora_rank
    lora_alpha = 1.0
    scaling = lora_alpha / r

    key = jax.random.PRNGKey(0)
    ks = jax.random.split(key, 10)

    # input
    x = jax.random.normal(ks[0], (B, T, C), dtype=jnp.float32)

    # c_attn = lora.Linear(C, 3C, r): base W (3C, C), bias (3C,), A (r, C), B (3C, r)
    w_attn_base = jax.random.normal(ks[1], (3 * C, C), jnp.float32) * 0.05
    b_attn_vec = jax.random.normal(ks[2], (3 * C,), jnp.float32) * 0.05
    lora_A_attn = jax.random.normal(ks[3], (r, C), jnp.float32) * 0.05
    lora_B_attn = jax.random.normal(ks[4], (3 * C, r), jnp.float32) * 0.05

    # c_proj = lora.Linear(C, C, r)
    w_proj_base = jax.random.normal(ks[5], (C, C), jnp.float32) * 0.05
    b_proj_vec = jax.random.normal(ks[6], (C,), jnp.float32) * 0.05
    lora_A_proj = jax.random.normal(ks[7], (r, C), jnp.float32) * 0.05
    lora_B_proj = jax.random.normal(ks[8], (C, r), jnp.float32) * 0.05

    # merge LoRA into effective weights (exactly equivalent to loralib's
    # two-path forward up to fp rounding); transpose to [in, out]
    w_attn = (w_attn_base + scaling * (lora_B_attn @ lora_A_attn)).T   # (C, 3C)
    w_proj = (w_proj_base + scaling * (lora_B_proj @ lora_A_proj)).T   # (C, C)

    out = attention_forward(x, w_attn, b_attn_vec, w_proj, b_proj_vec,
                            n_head=cfg.n_head)
    out = jax.block_until_ready(out)

    ref = attention_reference(x, w_attn, b_attn_vec, w_proj, b_proj_vec,
                              n_head=cfg.n_head)
    assert out.shape == (B, T, C)
    # tolerance accounts for pl.reciprocal(approx=True) in the softmax denom
    assert jnp.allclose(out, ref, atol=3e-3, rtol=3e-3), "mismatch vs reference"

    print("KERNEL_OK")
</pallas_src>

<mosaic_0001>
module attributes {stable_mosaic.version = 11 : i64} {
  func.func @kernel(%arg0: memref<16x32xf32, #tpu.memory_space<vmem>>, %arg1: memref<4x32x8xf32, #tpu.memory_space<vmem>>, %arg2: memref<4x32x8xf32, #tpu.memory_space<vmem>>, %arg3: memref<4x32x8xf32, #tpu.memory_space<vmem>>, %arg4: memref<4x1x8xf32, #tpu.memory_space<vmem>>, %arg5: memref<4x1x8xf32, #tpu.memory_space<vmem>>, %arg6: memref<4x1x8xf32, #tpu.memory_space<vmem>>, %arg7: memref<32x128xf32, #tpu.memory_space<vmem>>, %arg8: memref<1x128xf32, #tpu.memory_space<vmem>>, %arg9: memref<16x128xf32, #tpu.memory_space<vmem>>, %arg10: memref<16x32xf32, #tpu.memory_space<vmem>>) attributes {dimension_semantics = [], scalar_prefetch = 0 : i64, scratch_operands = 1 : i64, tpu.core_type = #tpu.core_type<tc>} {
    %c0 = arith.constant 0 : index
    %c0_0 = arith.constant 0 : index
    %0 = vector.load %arg0[%c0, %c0_0] : memref<16x32xf32, #tpu.memory_space<vmem>>, vector<16x32xf32>
    %1 = tpu.iota {dimensions = array<i32: 0>} : vector<8x8xi32>
    %2 = tpu.iota {dimensions = array<i32: 1>} : vector<8x8xi32>
    %3 = arith.cmpi sge, %1, %2 : vector<8x8xi32>
    %cst = arith.constant 0.000000e+00 : f32
    %cst_1 = arith.constant -1.000000e+30 : f32
    %4 = vector.broadcast %cst : f32 to vector<8x8xf32>
    %5 = vector.broadcast %cst_1 : f32 to vector<8x8xf32>
    %6 = arith.select %3, %4, %5 : vector<8x8xi1>, vector<8x8xf32>
    %7 = vector.shape_cast %6 : vector<8x8xf32> to vector<1x8x8xf32>
    %c0_2 = arith.constant 0 : index
    %c0_3 = arith.constant 0 : index
    %c0_4 = arith.constant 0 : index
    %8 = vector.load %arg1[%c0_2, %c0_3, %c0_4] : memref<4x32x8xf32, #tpu.memory_space<vmem>>, vector<1x32x8xf32>
    %9 = vector.shape_cast %8 : vector<1x32x8xf32> to vector<32x8xf32>
    %cst_5 = arith.constant dense<0.000000e+00> : vector<16x8xf32>
    %10 = tpu.matmul %0, %9, %cst_5 {dimension_numbers = #tpu.dot_dimension_numbers<[1], [0], [0], [1], [0, 0, 1, 1], [], []>} : vector<16x32xf32>, vector<32x8xf32>, vector<16x8xf32> -> vector<16x8xf32>
    %c0_6 = arith.constant 0 : index
    %c0_7 = arith.constant 0 : index
    %c0_8 = arith.constant 0 : index
    %11 = vector.load %arg4[%c0_6, %c0_7, %c0_8] : memref<4x1x8xf32, #tpu.memory_space<vmem>>, vector<1x1x8xf32>
    %12 = vector.shape_cast %11 : vector<1x1x8xf32> to vector<1x8xf32>
    %13 = vector.broadcast %12 : vector<1x8xf32> to vector<16x8xf32>
    %14 = arith.addf %10, %13 : vector<16x8xf32>
    %15 = vector.shape_cast %14 : vector<16x8xf32> to vector<2x8x8xf32>
    %c0_9 = arith.constant 0 : index
    %c0_10 = arith.constant 0 : index
    %c0_11 = arith.constant 0 : index
    %16 = vector.load %arg2[%c0_9, %c0_10, %c0_11] : memref<4x32x8xf32, #tpu.memory_space<vmem>>, vector<1x32x8xf32>
    %17 = vector.shape_cast %16 : vector<1x32x8xf32> to vector<32x8xf32>
    %cst_12 = arith.constant dense<0.000000e+00> : vector<16x8xf32>
    %18 = tpu.matmul %0, %17, %cst_12 {dimension_numbers = #tpu.dot_dimension_numbers<[1], [0], [0], [1], [0, 0, 1, 1], [], []>} : vector<16x32xf32>, vector<32x8xf32>, vector<16x8xf32> -> vector<16x8xf32>
    %c0_13 = arith.constant 0 : index
    %c0_14 = arith.constant 0 : index
    %c0_15 = arith.constant 0 : index
    %19 = vector.load %arg5[%c0_13, %c0_14, %c0_15] : memref<4x1x8xf32, #tpu.memory_space<vmem>>, vector<1x1x8xf32>
    %20 = vector.shape_cast %19 : vector<1x1x8xf32> to vector<1x8xf32>
    %21 = vector.broadcast %20 : vector<1x8xf32> to vector<16x8xf32>
    %22 = arith.addf %18, %21 : vector<16x8xf32>
    %23 = vector.shape_cast %22 : vector<16x8xf32> to vector<2x8x8xf32>
    %c0_16 = arith.constant 0 : index
    %c0_17 = arith.constant 0 : index
    %c0_18 = arith.constant 0 : index
    %24 = vector.load %arg3[%c0_16, %c0_17, %c0_18] : memref<4x32x8xf32, #tpu.memory_space<vmem>>, vector<1x32x8xf32>
    %25 = vector.shape_cast %24 : vector<1x32x8xf32> to vector<32x8xf32>
    %cst_19 = arith.constant dense<0.000000e+00> : vector<16x8xf32>
    %26 = tpu.matmul %0, %25, %cst_19 {dimension_numbers = #tpu.dot_dimension_numbers<[1], [0], [0], [1], [0, 0, 1, 1], [], []>} : vector<16x32xf32>, vector<32x8xf32>, vector<16x8xf32> -> vector<16x8xf32>
    %c0_20 = arith.constant 0 : index
    %c0_21 = arith.constant 0 : index
    %c0_22 = arith.constant 0 : index
    %27 = vector.load %arg6[%c0_20, %c0_21, %c0_22] : memref<4x1x8xf32, #tpu.memory_space<vmem>>, vector<1x1x8xf32>
    %28 = vector.shape_cast %27 : vector<1x1x8xf32> to vector<1x8xf32>
    %29 = vector.broadcast %28 : vector<1x8xf32> to vector<16x8xf32>
    %30 = arith.addf %26, %29 : vector<16x8xf32>
    %31 = vector.shape_cast %30 : vector<16x8xf32> to vector<2x8x8xf32>
    "tpu.trace_start"() <{level = 10 : i32, message = "bqd,bkd->bqk"}> : () -> ()
    %cst_23 = arith.constant dense<0.000000e+00> : vector<2x8x8xf32>
    %32 = tpu.matmul %15, %23, %cst_23 {dimension_numbers = #tpu.dot_dimension_numbers<[2], [2], [1], [1], [0, 0, 0, 1, 1, 1], [0], [0]>} : vector<2x8x8xf32>, vector<2x8x8xf32>, vector<2x8x8xf32> -> vector<2x8x8xf32>
    "tpu.trace_stop"() : () -> ()
    %33 = vector.broadcast %7 : vector<1x8x8xf32> to vector<2x8x8xf32>
    %34 = arith.addf %32, %33 : vector<2x8x8xf32>
    %cst_24 = arith.constant dense<0xFF800000> : vector<2x8xf32>
    %35 = vector.multi_reduction <maximumf>, %34, %cst_24 [2] : vector<2x8x8xf32> to vector<2x8xf32>
    %36 = vector.shape_cast %35 : vector<2x8xf32> to vector<2x8x1xf32>
    %37 = vector.broadcast %36 : vector<2x8x1xf32> to vector<2x8x8xf32>
    %38 = arith.subf %34, %37 : vector<2x8x8xf32>
    %39 = math.exp %38 : vector<2x8x8xf32>
    %cst_25 = arith.constant dense<0.000000e+00> : vector<2x8xf32>
    %40 = vector.multi_reduction <add>, %39, %cst_25 [2] : vector<2x8x8xf32> to vector<2x8xf32>
    %41 = vector.shape_cast %40 : vector<2x8xf32> to vector<2x8x1xf32>
    %42 = tpu.reciprocal %41 {approx = true} : vector<2x8x1xf32> -> vector<2x8x1xf32>
    %43 = vector.broadcast %42 : vector<2x8x1xf32> to vector<2x8x8xf32>
    %44 = arith.mulf %39, %43 : vector<2x8x8xf32>
    "tpu.trace_start"() <{level = 10 : i32, message = "bqk,bkd->bqd"}> : () -> ()
    %cst_26 = arith.constant dense<0.000000e+00> : vector<2x8x8xf32>
    %45 = tpu.matmul %44, %31, %cst_26 {dimension_numbers = #tpu.dot_dimension_numbers<[2], [1], [1], [2], [0, 0, 0, 1, 1, 2], [0], [0]>} : vector<2x8x8xf32>, vector<2x8x8xf32>, vector<2x8x8xf32> -> vector<2x8x8xf32>
    "tpu.trace_stop"() : () -> ()
    %46 = vector.shape_cast %45 : vector<2x8x8xf32> to vector<16x8xf32>
    %c0_27 = arith.constant 0 : index
    %c0_28 = arith.constant 0 : index
    %47 = vector.load %arg10[%c0_27, %c0_28] : memref<16x32xf32, #tpu.memory_space<vmem>>, vector<16x8xf32>
    tpu.vector_store %arg10[%c0_27, %c0_28], %46 {strides = array<i32>} : memref<16x32xf32, #tpu.memory_space<vmem>>, vector<16x8xf32>,
    %c1 = arith.constant 1 : index
    %c0_29 = arith.constant 0 : index
    %c0_30 = arith.constant 0 : index
    %48 = vector.load %arg1[%c1, %c0_29, %c0_30] : memref<4x32x8xf32, #tpu.memory_space<vmem>>, vector<1x32x8xf32>
    %49 = vector.shape_cast %48 : vector<1x32x8xf32> to vector<32x8xf32>
    %cst_31 = arith.constant dense<0.000000e+00> : vector<16x8xf32>
    %50 = tpu.matmul %0, %49, %cst_31 {dimension_numbers = #tpu.dot_dimension_numbers<[1], [0], [0], [1], [0, 0, 1, 1], [], []>} : vector<16x32xf32>, vector<32x8xf32>, vector<16x8xf32> -> vector<16x8xf32>
    %c1_32 = arith.constant 1 : index
    %c0_33 = arith.constant 0 : index
    %c0_34 = arith.constant 0 : index
    %51 = vector.load %arg4[%c1_32, %c0_33, %c0_34] : memref<4x1x8xf32, #tpu.memory_space<vmem>>, vector<1x1x8xf32>
    %52 = vector.shape_cast %51 : vector<1x1x8xf32> to vector<1x8xf32>
    %53 = vector.broadcast %52 : vector<1x8xf32> to vector<16x8xf32>
    %54 = arith.addf %50, %53 : vector<16x8xf32>
    %55 = vector.shape_cast %54 : vector<16x8xf32> to vector<2x8x8xf32>
    %c1_35 = arith.constant 1 : index
    %c0_36 = arith.constant 0 : index
    %c0_37 = arith.constant 0 : index
    %56 = vector.load %arg2[%c1_35, %c0_36, %c0_37] : memref<4x32x8xf32, #tpu.memory_space<vmem>>, vector<1x32x8xf32>
    %57 = vector.shape_cast %56 : vector<1x32x8xf32> to vector<32x8xf32>
    %cst_38 = arith.constant dense<0.000000e+00> : vector<16x8xf32>
    %58 = tpu.matmul %0, %57, %cst_38 {dimension_numbers = #tpu.dot_dimension_numbers<[1], [0], [0], [1], [0, 0, 1, 1], [], []>} : vector<16x32xf32>, vector<32x8xf32>, vector<16x8xf32> -> vector<16x8xf32>
    %c1_39 = arith.constant 1 : index
    %c0_40 = arith.constant 0 : index
    %c0_41 = arith.constant 0 : index
    %59 = vector.load %arg5[%c1_39, %c0_40, %c0_41] : memref<4x1x8xf32, #tpu.memory_space<vmem>>, vector<1x1x8xf32>
    %60 = vector.shape_cast %59 : vector<1x1x8xf32> to vector<1x8xf32>
    %61 = vector.broadcast %60 : vector<1x8xf32> to vector<16x8xf32>
    %62 = arith.addf %58, %61 : vector<16x8xf32>
    %63 = vector.shape_cast %62 : vector<16x8xf32> to vector<2x8x8xf32>
    %c1_42 = arith.constant 1 : index
    %c0_43 = arith.constant 0 : index
    %c0_44 = arith.constant 0 : index
    %64 = vector.load %arg3[%c1_42, %c0_43, %c0_44] : memref<4x32x8xf32, #tpu.memory_space<vmem>>, vector<1x32x8xf32>
    %65 = vector.shape_cast %64 : vector<1x32x8xf32> to vector<32x8xf32>
    %cst_45 = arith.constant dense<0.000000e+00> : vector<16x8xf32>
    %66 = tpu.matmul %0, %65, %cst_45 {dimension_numbers = #tpu.dot_dimension_numbers<[1], [0], [0], [1], [0, 0, 1, 1], [], []>} : vector<16x32xf32>, vector<32x8xf32>, vector<16x8xf32> -> vector<16x8xf32>
    %c1_46 = arith.constant 1 : index
    %c0_47 = arith.constant 0 : index
    %c0_48 = arith.constant 0 : index
    %67 = vector.load %arg6[%c1_46, %c0_47, %c0_48] : memref<4x1x8xf32, #tpu.memory_space<vmem>>, vector<1x1x8xf32>
    %68 = vector.shape_cast %67 : vector<1x1x8xf32> to vector<1x8xf32>
    %69 = vector.broadcast %68 : vector<1x8xf32> to vector<16x8xf32>
    %70 = arith.addf %66, %69 : vector<16x8xf32>
    %71 = vector.shape_cast %70 : vector<16x8xf32> to vector<2x8x8xf32>
    "tpu.trace_start"() <{level = 10 : i32, message = "bqd,bkd->bqk"}> : () -> ()
    %cst_49 = arith.constant dense<0.000000e+00> : vector<2x8x8xf32>
    %72 = tpu.matmul %55, %63, %cst_49 {dimension_numbers = #tpu.dot_dimension_numbers<[2], [2], [1], [1], [0, 0, 0, 1, 1, 1], [0], [0]>} : vector<2x8x8xf32>, vector<2x8x8xf32>, vector<2x8x8xf32> -> vector<2x8x8xf32>
    "tpu.trace_stop"() : () -> ()
    %73 = vector.broadcast %7 : vector<1x8x8xf32> to vector<2x8x8xf32>
    %74 = arith.addf %72, %73 : vector<2x8x8xf32>
    %cst_50 = arith.constant dense<0xFF800000> : vector<2x8xf32>
    %75 = vector.multi_reduction <maximumf>, %74, %cst_50 [2] : vector<2x8x8xf32> to vector<2x8xf32>
    %76 = vector.shape_cast %75 : vector<2x8xf32> to vector<2x8x1xf32>
    %77 = vector.broadcast %76 : vector<2x8x1xf32> to vector<2x8x8xf32>
    %78 = arith.subf %74, %77 : vector<2x8x8xf32>
    %79 = math.exp %78 : vector<2x8x8xf32>
    %cst_51 = arith.constant dense<0.000000e+00> : vector<2x8xf32>
    %80 = vector.multi_reduction <add>, %79, %cst_51 [2] : vector<2x8x8xf32> to vector<2x8xf32>
    %81 = vector.shape_cast %80 : vector<2x8xf32> to vector<2x8x1xf32>
    %82 = tpu.reciprocal %81 {approx = true} : vector<2x8x1xf32> -> vector<2x8x1xf32>
    %83 = vector.broadcast %82 : vector<2x8x1xf32> to vector<2x8x8xf32>
    %84 = arith.mulf %79, %83 : vector<2x8x8xf32>
    "tpu.trace_start"() <{level = 10 : i32, message = "bqk,bkd->bqd"}> : () -> ()
    %cst_52 = arith.constant dense<0.000000e+00> : vector<2x8x8xf32>
    %85 = tpu.matmul %84, %71, %cst_52 {dimension_numbers = #tpu.dot_dimension_numbers<[2], [1], [1], [2], [0, 0, 0, 1, 1, 2], [0], [0]>} : vector<2x8x8xf32>, vector<2x8x8xf32>, vector<2x8x8xf32> -> vector<2x8x8xf32>
    "tpu.trace_stop"() : () -> ()
    %86 = vector.shape_cast %85 : vector<2x8x8xf32> to vector<16x8xf32>
    %c0_53 = arith.constant 0 : index
    %c8 = arith.constant 8 : index
    %87 = vector.load %arg10[%c0_53, %c8] : memref<16x32xf32, #tpu.memory_space<vmem>>, vector<16x8xf32>
    tpu.vector_store %arg10[%c0_53, %c8], %86 {strides = array<i32>} : memref<16x32xf32, #tpu.memory_space<vmem>>, vector<16x8xf32>,
    %c2 = arith.constant 2 : index
    %c0_54 = arith.constant 0 : index
    %c0_55 = arith.constant 0 : index
    %88 = vector.load %arg1[%c2, %c0_54, %c0_55] : memref<4x32x8xf32, #tpu.memory_space<vmem>>, vector<1x32x8xf32>
    %89 = vector.shape_cast %88 : vector<1x32x8xf32> to vector<32x8xf32>
    %cst_56 = arith.constant dense<0.000000e+00> : vector<16x8xf32>
    %90 = tpu.matmul %0, %89, %cst_56 {dimension_numbers = #tpu.dot_dimension_numbers<[1], [0], [0], [1], [0, 0, 1, 1], [], []>} : vector<16x32xf32>, vector<32x8xf32>, vector<16x8xf32> -> vector<16x8xf32>
    %c2_57 = arith.constant 2 : index
    %c0_58 = arith.constant 0 : index
    %c0_59 = arith.constant 0 : index
    %91 = vector.load %arg4[%c2_57, %c0_58, %c0_59] : memref<4x1x8xf32, #tpu.memory_space<vmem>>, vector<1x1x8xf32>
    %92 = vector.shape_cast %91 : vector<1x1x8xf32> to vector<1x8xf32>
    %93 = vector.broadcast %92 : vector<1x8xf32> to vector<16x8xf32>
    %94 = arith.addf %90, %93 : vector<16x8xf32>
    %95 = vector.shape_cast %94 : vector<16x8xf32> to vector<2x8x8xf32>
    %c2_60 = arith.constant 2 : index
    %c0_61 = arith.constant 0 : index
    %c0_62 = arith.constant 0 : index
    %96 = vector.load %arg2[%c2_60, %c0_61, %c0_62] : memref<4x32x8xf32, #tpu.memory_space<vmem>>, vector<1x32x8xf32>
    %97 = vector.shape_cast %96 : vector<1x32x8xf32> to vector<32x8xf32>
    %cst_63 = arith.constant dense<0.000000e+00> : vector<16x8xf32>
    %98 = tpu.matmul %0, %97, %cst_63 {dimension_numbers = #tpu.dot_dimension_numbers<[1], [0], [0], [1], [0, 0, 1, 1], [], []>} : vector<16x32xf32>, vector<32x8xf32>, vector<16x8xf32> -> vector<16x8xf32>
    %c2_64 = arith.constant 2 : index
    %c0_65 = arith.constant 0 : index
    %c0_66 = arith.constant 0 : index
    %99 = vector.load %arg5[%c2_64, %c0_65, %c0_66] : memref<4x1x8xf32, #tpu.memory_space<vmem>>, vector<1x1x8xf32>
    %100 = vector.shape_cast %99 : vector<1x1x8xf32> to vector<1x8xf32>
    %101 = vector.broadcast %100 : vector<1x8xf32> to vector<16x8xf32>
    %102 = arith.addf %98, %101 : vector<16x8xf32>
    %103 = vector.shape_cast %102 : vector<16x8xf32> to vector<2x8x8xf32>
    %c2_67 = arith.constant 2 : index
    %c0_68 = arith.constant 0 : index
    %c0_69 = arith.constant 0 : index
    %104 = vector.load %arg3[%c2_67, %c0_68, %c0_69] : memref<4x32x8xf32, #tpu.memory_space<vmem>>, vector<1x32x8xf32>
    %105 = vector.shape_cast %104 : vector<1x32x8xf32> to vector<32x8xf32>
    %cst_70 = arith.constant dense<0.000000e+00> : vector<16x8xf32>
    %106 = tpu.matmul %0, %105, %cst_70 {dimension_numbers = #tpu.dot_dimension_numbers<[1], [0], [0], [1], [0, 0, 1, 1], [], []>} : vector<16x32xf32>, vector<32x8xf32>, vector<16x8xf32> -> vector<16x8xf32>
    %c2_71 = arith.constant 2 : index
    %c0_72 = arith.constant 0 : index
    %c0_73 = arith.constant 0 : index
    %107 = vector.load %arg6[%c2_71, %c0_72, %c0_73] : memref<4x1x8xf32, #tpu.memory_space<vmem>>, vector<1x1x8xf32>
    %108 = vector.shape_cast %107 : vector<1x1x8xf32> to vector<1x8xf32>
    %109 = vector.broadcast %108 : vector<1x8xf32> to vector<16x8xf32>
    %110 = arith.addf %106, %109 : vector<16x8xf32>
    %111 = vector.shape_cast %110 : vector<16x8xf32> to vector<2x8x8xf32>
    "tpu.trace_start"() <{level = 10 : i32, message = "bqd,bkd->bqk"}> : () -> ()
    %cst_74 = arith.constant dense<0.000000e+00> : vector<2x8x8xf32>
    %112 = tpu.matmul %95, %103, %cst_74 {dimension_numbers = #tpu.dot_dimension_numbers<[2], [2], [1], [1], [0, 0, 0, 1, 1, 1], [0], [0]>} : vector<2x8x8xf32>, vector<2x8x8xf32>, vector<2x8x8xf32> -> vector<2x8x8xf32>
    "tpu.trace_stop"() : () -> ()
    %113 = vector.broadcast %7 : vector<1x8x8xf32> to vector<2x8x8xf32>
    %114 = arith.addf %112, %113 : vector<2x8x8xf32>
    %cst_75 = arith.constant dense<0xFF800000> : vector<2x8xf32>
    %115 = vector.multi_reduction <maximumf>, %114, %cst_75 [2] : vector<2x8x8xf32> to vector<2x8xf32>
    %116 = vector.shape_cast %115 : vector<2x8xf32> to vector<2x8x1xf32>
    %117 = vector.broadcast %116 : vector<2x8x1xf32> to vector<2x8x8xf32>
    %118 = arith.subf %114, %117 : vector<2x8x8xf32>
    %119 = math.exp %118 : vector<2x8x8xf32>
    %cst_76 = arith.constant dense<0.000000e+00> : vector<2x8xf32>
    %120 = vector.multi_reduction <add>, %119, %cst_76 [2] : vector<2x8x8xf32> to vector<2x8xf32>
    %121 = vector.shape_cast %120 : vector<2x8xf32> to vector<2x8x1xf32>
    %122 = tpu.reciprocal %121 {approx = true} : vector<2x8x1xf32> -> vector<2x8x1xf32>
    %123 = vector.broadcast %122 : vector<2x8x1xf32> to vector<2x8x8xf32>
    %124 = arith.mulf %119, %123 : vector<2x8x8xf32>
    "tpu.trace_start"() <{level = 10 : i32, message = "bqk,bkd->bqd"}> : () -> ()
    %cst_77 = arith.constant dense<0.000000e+00> : vector<2x8x8xf32>
    %125 = tpu.matmul %124, %111, %cst_77 {dimension_numbers = #tpu.dot_dimension_numbers<[2], [1], [1], [2], [0, 0, 0, 1, 1, 2], [0], [0]>} : vector<2x8x8xf32>, vector<2x8x8xf32>, vector<2x8x8xf32> -> vector<2x8x8xf32>
    "tpu.trace_stop"() : () -> ()
    %126 = vector.shape_cast %125 : vector<2x8x8xf32> to vector<16x8xf32>
    %c0_78 = arith.constant 0 : index
    %c16 = arith.constant 16 : index
    %127 = vector.load %arg10[%c0_78, %c16] : memref<16x32xf32, #tpu.memory_space<vmem>>, vector<16x8xf32>
    tpu.vector_store %arg10[%c0_78, %c16], %126 {strides = array<i32>} : memref<16x32xf32, #tpu.memory_space<vmem>>, vector<16x8xf32>,
    %c3 = arith.constant 3 : index
    %c0_79 = arith.constant 0 : index
    %c0_80 = arith.constant 0 : index
    %128 = vector.load %arg1[%c3, %c0_79, %c0_80] : memref<4x32x8xf32, #tpu.memory_space<vmem>>, vector<1x32x8xf32>
    %129 = vector.shape_cast %128 : vector<1x32x8xf32> to vector<32x8xf32>
    %cst_81 = arith.constant dense<0.000000e+00> : vector<16x8xf32>
    %130 = tpu.matmul %0, %129, %cst_81 {dimension_numbers = #tpu.dot_dimension_numbers<[1], [0], [0], [1], [0, 0, 1, 1], [], []>} : vector<16x32xf32>, vector<32x8xf32>, vector<16x8xf32> -> vector<16x8xf32>
    %c3_82 = arith.constant 3 : index
    %c0_83 = arith.constant 0 : index
    %c0_84 = arith.constant 0 : index
    %131 = vector.load %arg4[%c3_82, %c0_83, %c0_84] : memref<4x1x8xf32, #tpu.memory_space<vmem>>, vector<1x1x8xf32>
    %132 = vector.shape_cast %131 : vector<1x1x8xf32> to vector<1x8xf32>
    %133 = vector.broadcast %132 : vector<1x8xf32> to vector<16x8xf32>
    %134 = arith.addf %130, %133 : vector<16x8xf32>
    %135 = vector.shape_cast %134 : vector<16x8xf32> to vector<2x8x8xf32>
    %c3_85 = arith.constant 3 : index
    %c0_86 = arith.constant 0 : index
    %c0_87 = arith.constant 0 : index
    %136 = vector.load %arg2[%c3_85, %c0_86, %c0_87] : memref<4x32x8xf32, #tpu.memory_space<vmem>>, vector<1x32x8xf32>
    %137 = vector.shape_cast %136 : vector<1x32x8xf32> to vector<32x8xf32>
    %cst_88 = arith.constant dense<0.000000e+00> : vector<16x8xf32>
    %138 = tpu.matmul %0, %137, %cst_88 {dimension_numbers = #tpu.dot_dimension_numbers<[1], [0], [0], [1], [0, 0, 1, 1], [], []>} : vector<16x32xf32>, vector<32x8xf32>, vector<16x8xf32> -> vector<16x8xf32>
    %c3_89 = arith.constant 3 : index
    %c0_90 = arith.constant 0 : index
    %c0_91 = arith.constant 0 : index
    %139 = vector.load %arg5[%c3_89, %c0_90, %c0_91] : memref<4x1x8xf32, #tpu.memory_space<vmem>>, vector<1x1x8xf32>
    %140 = vector.shape_cast %139 : vector<1x1x8xf32> to vector<1x8xf32>
    %141 = vector.broadcast %140 : vector<1x8xf32> to vector<16x8xf32>
    %142 = arith.addf %138, %141 : vector<16x8xf32>
    %143 = vector.shape_cast %142 : vector<16x8xf32> to vector<2x8x8xf32>
    %c3_92 = arith.constant 3 : index
    %c0_93 = arith.constant 0 : index
    %c0_94 = arith.constant 0 : index
    %144 = vector.load %arg3[%c3_92, %c0_93, %c0_94] : memref<4x32x8xf32, #tpu.memory_space<vmem>>, vector<1x32x8xf32>
    %145 = vector.shape_cast %144 : vector<1x32x8xf32> to vector<32x8xf32>
    %cst_95 = arith.constant dense<0.000000e+00> : vector<16x8xf32>
    %146 = tpu.matmul %0, %145, %cst_95 {dimension_numbers = #tpu.dot_dimension_numbers<[1], [0], [0], [1], [0, 0, 1, 1], [], []>} : vector<16x32xf32>, vector<32x8xf32>, vector<16x8xf32> -> vector<16x8xf32>
    %c3_96 = arith.constant 3 : index
    %c0_97 = arith.constant 0 : index
    %c0_98 = arith.constant 0 : index
    %147 = vector.load %arg6[%c3_96, %c0_97, %c0_98] : memref<4x1x8xf32, #tpu.memory_space<vmem>>, vector<1x1x8xf32>
    %148 = vector.shape_cast %147 : vector<1x1x8xf32> to vector<1x8xf32>
    %149 = vector.broadcast %148 : vector<1x8xf32> to vector<16x8xf32>
    %150 = arith.addf %146, %149 : vector<16x8xf32>
    %151 = vector.shape_cast %150 : vector<16x8xf32> to vector<2x8x8xf32>
    "tpu.trace_start"() <{level = 10 : i32, message = "bqd,bkd->bqk"}> : () -> ()
    %cst_99 = arith.constant dense<0.000000e+00> : vector<2x8x8xf32>
    %152 = tpu.matmul %135, %143, %cst_99 {dimension_numbers = #tpu.dot_dimension_numbers<[2], [2], [1], [1], [0, 0, 0, 1, 1, 1], [0], [0]>} : vector<2x8x8xf32>, vector<2x8x8xf32>, vector<2x8x8xf32> -> vector<2x8x8xf32>
    "tpu.trace_stop"() : () -> ()
    %153 = vector.broadcast %7 : vector<1x8x8xf32> to vector<2x8x8xf32>
    %154 = arith.addf %152, %153 : vector<2x8x8xf32>
    %cst_100 = arith.constant dense<0xFF800000> : vector<2x8xf32>
    %155 = vector.multi_reduction <maximumf>, %154, %cst_100 [2] : vector<2x8x8xf32> to vector<2x8xf32>
    %156 = vector.shape_cast %155 : vector<2x8xf32> to vector<2x8x1xf32>
    %157 = vector.broadcast %156 : vector<2x8x1xf32> to vector<2x8x8xf32>
    %158 = arith.subf %154, %157 : vector<2x8x8xf32>
    %159 = math.exp %158 : vector<2x8x8xf32>
    %cst_101 = arith.constant dense<0.000000e+00> : vector<2x8xf32>
    %160 = vector.multi_reduction <add>, %159, %cst_101 [2] : vector<2x8x8xf32> to vector<2x8xf32>
    %161 = vector.shape_cast %160 : vector<2x8xf32> to vector<2x8x1xf32>
    %162 = tpu.reciprocal %161 {approx = true} : vector<2x8x1xf32> -> vector<2x8x1xf32>
    %163 = vector.broadcast %162 : vector<2x8x1xf32> to vector<2x8x8xf32>
    %164 = arith.mulf %159, %163 : vector<2x8x8xf32>
    "tpu.trace_start"() <{level = 10 : i32, message = "bqk,bkd->bqd"}> : () -> ()
    %cst_102 = arith.constant dense<0.000000e+00> : vector<2x8x8xf32>
    %165 = tpu.matmul %164, %151, %cst_102 {dimension_numbers = #tpu.dot_dimension_numbers<[2], [1], [1], [2], [0, 0, 0, 1, 1, 2], [0], [0]>} : vector<2x8x8xf32>, vector<2x8x8xf32>, vector<2x8x8xf32> -> vector<2x8x8xf32>
    "tpu.trace_stop"() : () -> ()
    %166 = vector.shape_cast %165 : vector<2x8x8xf32> to vector<16x8xf32>
    %c0_103 = arith.constant 0 : index
    %c24 = arith.constant 24 : index
    %167 = vector.load %arg10[%c0_103, %c24] : memref<16x32xf32, #tpu.memory_space<vmem>>, vector<16x8xf32>
    tpu.vector_store %arg10[%c0_103, %c24], %166 {strides = array<i32>} : memref<16x32xf32, #tpu.memory_space<vmem>>, vector<16x8xf32>,
    %c0_104 = arith.constant 0 : index
    %c0_105 = arith.constant 0 : index
    %168 = vector.load %arg10[%c0_104, %c0_105] : memref<16x32xf32, #tpu.memory_space<vmem>>, vector<16x32xf32>
    %c0_106 = arith.constant 0 : index
    %c0_107 = arith.constant 0 : index
    %169 = vector.load %arg7[%c0_106, %c0_107] : memref<32x128xf32, #tpu.memory_space<vmem>>, vector<32x128xf32>
    %cst_108 = arith.constant dense<0.000000e+00> : vector<16x128xf32>
    %170 = tpu.matmul %168, %169, %cst_108 {dimension_numbers = #tpu.dot_dimension_numbers<[1], [0], [0], [1], [0, 0, 1, 1], [], []>} : vector<16x32xf32>, vector<32x128xf32>, vector<16x128xf32> -> vector<16x128xf32>
    %c0_109 = arith.constant 0 : index
    %c0_110 = arith.constant 0 : index
    %171 = vector.load %arg8[%c0_109, %c0_110] : memref<1x128xf32, #tpu.memory_space<vmem>>, vector<1x128xf32>
    %172 = vector.shape_cast %171 : vector<1x128xf32> to vector<128xf32>
    %173 = vector.shape_cast %172 : vector<128xf32> to vector<1x128xf32>
    %174 = vector.broadcast %173 : vector<1x128xf32> to vector<16x128xf32>
    %175 = arith.addf %170, %174 : vector<16x128xf32>
    %c0_111 = arith.constant 0 : index
    %c0_112 = arith.constant 0 : index
    %176 = vector.load %arg9[%c0_111, %c0_112] : memref<16x128xf32, #tpu.memory_space<vmem>>, vector<16x128xf32>
    tpu.vector_store %arg9[%c0_111, %c0_112], %175 {strides = array<i32>} : memref<16x128xf32, #tpu.memory_space<vmem>>, vector<16x128xf32>,
    return
  }
}

</mosaic_0001>

<bundles_post_ra>
// kernel: tpu_custom_call.1
= control target key start
LH: loop header
LB: loop body
LE: loop exit
PB: predicated region body
PF: predicated region fallthrough
CT: control target
= control target key end

     0   :  { %vm49_vm0 = vcmask 261120   ;;  %s1562_s0 = inlined_call_operand.vmem [shape: f32[16,32], index: 0, kind: input, shape index: {}]   ;;  %s1563_s1 = inlined_call_operand.vmem [shape: f32[4,32,8], index: 1, kind: input, shape index: {}]   ;;  %s1564_s2 = inlined_call_operand.vmem [shape: f32[4,32,8], index: 2, kind: input, shape index: {}]   ;;  %s1565_s3 = inlined_call_operand.vmem [shape: f32[4,32,8], index: 3, kind: input, shape index: {}]   ;;  %s1566_s4 = inlined_call_operand.vmem [shape: f32[4,1,8], index: 4, kind: input, shape index: {}]   ;;  %s1567_s5 = inlined_call_operand.vmem [shape: f32[4,1,8], index: 5, kind: input, shape index: {}]   ;;  %s1568_s6 = inlined_call_operand.vmem [shape: f32[4,1,8], index: 6, kind: input, shape index: {}]   ;;  %s1569_s7 = inlined_call_operand.vmem [shape: f32[32,128], index: 7, kind: input, shape index: {}]   ;;  %s1570_s8 = inlined_call_operand.vmem [shape: f32[1,128], index: 8, kind: input, shape index: {}]   ;;  %s1571_s9 = inlined_call_operand.hbm [shape: f32[16,128], index: 9, kind: output, shape index: {}]  }
   0x1   :  { %v82_v0 = vld [vmem:[%s1564_s2 + $0x18] sm:$0xff]  ;;  %v81_v1 = vld [vmem:[%s1564_s2 + $0x10] sm:$0xff]  ;;  %v80_v4 = vld [vmem:[%s1564_s2 + $0x8] sm:$0xff] }
   0x2   :  { %v44_v2 = vld [vmem:[%s1563_s1 + $0x18] sm:$0xff]  ;;  %99 = vmatpush.msra.mxu1 %v82_v0  ;;  %v43_v3 = vld [vmem:[%s1563_s1 + $0x10] sm:$0xff]  ;;  %v79_v5 = vld [vmem:[%s1564_s2] sm:$0xff] }
   0x3   :  { %68 = vmatpush.msra.mxu0 %v44_v2  ;;  %v42_v6 = vld [vmem:[%s1563_s1 + $0x8] sm:$0xff]  ;;  %v1265_v7 = vld [vmem:[%s1562_s0] sm:$0xff] }
   0x4   :  { %100 = vmatpush.msra.mxu1 %v81_v1  ;;  %v41_v8 = vld [vmem:[%s1563_s1] sm:$0xff] }
   0x5   :  { %69 = vmatpush.msra.mxu0 %v43_v3 }
   0x6   :  { %101 = vmatpush.msra.mxu1 %v80_v4 }
   0x7   :  { %70 = vmatpush.msra.mxu0 %v42_v6 }
   0x8   :  { %102 = vmatpush.msra.mxu1 %v79_v5 }
   0x9   :  { %71 = vmatpush.msra.mxu0 %v41_v8  ;;  %1015 = vmatmul.msk.f32.vlgmr.msra.gmra.mxu1 %vm49_vm0, %v1265_v7 }
   0xa   :  { %1013 = vmatmul.msk.f32.vlgmr.msra.gmra.mxu0 %vm49_vm0, %v1265_v7 }
   0xb   :  { %14 = vsyncpa [#allocation4], 0  ;;  %v1277_v9 = vld [vmem:[%s1562_s0 + $0x8] sm:$0xff]  ;;  %v1114_v10 = vld [vmem:[%s1567_s5] ss:$0 sm:$0xff]  ;;  %vm141_vm1 = vcmask 64512   ;;  %v35_v22 = vlaneseq }
   0xc   :  { %v1115_v11 = vld [vmem:[%s1566_s4] ss:$0 sm:$0xff]  ;;  %v113_v20 = vld [vmem:[%s1565_s3 + $0x18] sm:$0xff]  ;;  %v112_v21 = vld [vmem:[%s1565_s3 + $0x10] sm:$0xff]  ;;  %v1185_v26 = vmov -1e+30  }
   0xd   :  { %130 = vmatpush.msra.mxu2 %v113_v20  ;;  %v111_v23 = vld [vmem:[%s1565_s3 + $0x8] sm:$0xff]  ;;  %v36_v24 = vshrl.u32 %v35_v22, 7  ;;  %v38_v25 = vand.u32 127, %v35_v22  ;;  %v110_v34 = vld [vmem:[%s1565_s3] sm:$0xff]  ;;  %v1035_v35 = vld [vmem:[%s1564_s2 + $0x38] sm:$0xff]  ;;  %s1186_s17 = smov 8  }
   0xe   :  { %v1034_v36 = vld [vmem:[%s1564_s2 + $0x30] sm:$0xff]  ;;  %v1033_v37 = vld [vmem:[%s1564_s2 + $0x28] sm:$0xff]  ;;  %v1028_v38 = vld [vmem:[%s1563_s1 + $0x38] sm:$0xff]  ;;  %s1187_s18 = smov 16   ;;  %vm491_vm3 = vcmask 130112   ;;  %vm721_vm4 = vcmask 195712  }
   0xf   :  { %131 = vmatpush.msra.mxu2 %v112_v21  ;;  %vm39_vm2 = vcmp.ge.s32.totalorder %v36_v24, %v38_v25  ;;  %v1032_v39 = vld [vmem:[%s1564_s2 + $0x20] sm:$0xff]  ;;  %286 = vmatpush.msrb.mxu1 %v1028_v38  ;;  %v1027_v40 = vld [vmem:[%s1563_s1 + $0x30] sm:$0xff]  ;;  %v1026_v41 = vld [vmem:[%s1563_s1 + $0x28] sm:$0xff]  ;;  %s1188_s21 = smov 24   ;;  %vm951_vm5 = vcmask 261312   ;;  %s1190_s10 = smov 128  }
  0x10   :  { %v1302_v27 = vsel %vm39_vm2, 0.0, %v1185_v26  ;;  %v1025_v42 = vld [vmem:[%s1563_s1 + $0x20] sm:$0xff]  ;;  %v1055_v24 = vld [vmem:[%s1563_s1 + $0x58] sm:$0xff]  ;;  %v1054_v25 = vld [vmem:[%s1563_s1 + $0x50] sm:$0xff] }
  0x11   :  { %1016 = vmatmul.msk.f32.gmra.mxu1 %vm49_vm0, %v1277_v9  ;;  %132 = vmatpush.msra.mxu2 %v111_v23  ;;  %v1116_v53 = vld [vmem:[%s1568_s6] ss:$0 sm:$0xff]  ;;  %v1117_v58 = vld [vmem:[%s1567_s5 + $0x1] ss:$0 sm:$0xff]  ;;  %v1062_v26 = vld [vmem:[%s1564_s2 + $0x58] sm:$0xff] }
  0x12   :  { %1014 = vmatmul.msk.f32.gmra.mxu0 %vm49_vm0, %v1277_v9  ;;  %287 = vmatpush.msrb.mxu1 %v1027_v40  ;;  %v1118_v6 = vld [vmem:[%s1566_s4 + $0x1] ss:$0 sm:$0xff] }
  0x13   :  { %133 = vmatpush.msra.mxu2 %v110_v34 }
  0x14   :  { %1017 = vmatmul.msk.f32.vlgmr.msra.gmra.mxu2 %vm49_vm0, %v1265_v7  ;;  %288 = vmatpush.msrb.mxu1 %v1026_v41 }
  0x15   :  { %319 = vmatpush.msrb.mxu2 %v1035_v35 }
  0x16   :  { %289 = vmatpush.msrb.mxu1 %v1025_v42 }
  0x17   :  { %320 = vmatpush.msrb.mxu2 %v1034_v36 }
  0x19   :  { %321 = vmatpush.msrb.mxu2 %v1033_v37  ;;  %1030 = vmatmul.msk.f32.vlgmr.msrb.gmra.mxu1 %vm49_vm0, %v1265_v7 }
  0x1b   :  { %322 = vmatpush.msrb.mxu2 %v1032_v39 }
  0x1c   :  { %1018 = vmatmul.msk.f32.gmra.mxu2 %vm49_vm0, %v1277_v9 }
  0x21   :  { %1031 = vmatmul.msk.f32.gmra.mxu1 %vm49_vm0, %v1277_v9 }
  0x24   :  { %1037 = vmatmul.msk.f32.vlgmr.msrb.gmra.mxu2 %vm49_vm0, %v1265_v7 }
  0x2c   :  { %1038 = vmatmul.msk.f32.gmra.mxu2 %vm49_vm0, %v1277_v9 }
  0x86   :  { %v104_v12 = vpop.f32.mrf.mxu1 }
  0x87   :  { %v73_v13 = vpop.f32.mrf.mxu0  ;;  %v105_v14 = vadd.f32 %v1114_v10, %v104_v12  ;;  %v1042_v12 = vld [vmem:[%s1565_s3 + $0x38] sm:$0xff] }
  0x88   :  { %v74_v15 = vadd.f32 %v1115_v11, %v73_v13  ;;  %v1041_v13 = vld [vmem:[%s1565_s3 + $0x30] sm:$0xff] }
  0x89   :  { %1019 = vmatpush.xpose.msk.msrb.mxu0 %vm141_vm1, %v105_v14  ;;  %v1040_v14 = vld [vmem:[%s1565_s3 + $0x28] sm:$0xff] }
  0x8c   :  { %1020 = vmatmul.msk.f32.vlgmr.msrb.gmra.mxu0 %vm141_vm1, %v74_v15 }
  0x8e   :  { %v107_v16 = vpop.f32.mrf.mxu1 }
  0x8f   :  { %v76_v17 = vpop.f32.mrf.mxu0  ;;  %v108_v18 = vadd.f32 %v1114_v10, %v107_v16  ;;  %v1039_v16 = vld [vmem:[%s1565_s3 + $0x20] sm:$0xff] }
  0x90   :  { %v77_v19 = vadd.f32 %v1115_v11, %v76_v17 }
  0x91   :  { %1021 = vmatpush.xpose.msk.msra.mxu3 %vm141_vm1, %v108_v18 }
  0x94   :  { %1022 = vmatmul.msk.f32.vlgmr.msra.gmra.mxu3 %vm141_vm1, %v77_v19 }
  0x96   :  { %v291_v5 = vpop.f32.mrf.mxu1 }
  0x97   :  { %v135_v54 = vpop.f32.mrf.mxu2  ;;  %v292_v8 = vadd.f32 %v1118_v6, %v291_v5 }
  0x98   :  { %v136_v55 = vadd.f32 %v1116_v53, %v135_v54 }
  0x9a   :  { %234 = vmatpush.msrb.mxu3 %v136_v55 }
  0x9c   :  { %352 = vmatpush.msra.mxu3 %v1042_v12 }
  0x9e   :  { %v294_v10 = vpop.f32.mrf.mxu1  ;;  %353 = vmatpush.msra.mxu3 %v1041_v13  ;;  %v1089_v13 = vld [vmem:[%s1564_s2 + $0x78] sm:$0xff] }
  0x9f   :  { %v138_v56 = vpop.f32.mrf.mxu2  ;;  %v295_v11 = vadd.f32 %v1118_v6, %v294_v10 }
  0xa0   :  { %v139_v57 = vadd.f32 %v1116_v53, %v138_v56  ;;  %354 = vmatpush.msra.mxu3 %v1040_v14  ;;  %v1088_v14 = vld [vmem:[%s1564_s2 + $0x70] sm:$0xff] }
  0xa2   :  { %257 = vmatpush.msra.mxu0 %v139_v57  ;;  %355 = vmatpush.msra.mxu3 %v1039_v16  ;;  %v1082_v16 = vld [vmem:[%s1563_s1 + $0x78] sm:$0xff] }
  0xa7   :  { %v324_v59 = vpop.f32.mrf.mxu2 }
  0xa8   :  { %v325_v60 = vadd.f32 %v1117_v58, %v324_v59 }
  0xaa   :  { %1046 = vmatpush.xpose.msk.msrb.mxu0 %vm141_vm1, %v325_v60  ;;  %v1121_v60 = vld [vmem:[%s1566_s4 + $0x2] ss:$0 sm:$0xff] }
  0xaf   :  { %v327_v1 = vpop.f32.mrf.mxu2 }
  0xb0   :  { %v328_v3 = vadd.f32 %v1117_v58, %v327_v1  ;;  %v1068_v1 = vld [vmem:[%s1565_s3 + $0x50] sm:$0xff] }
 0x109   :  { %v165_v28 = vpop.f32.mrf.mxu0 }
 0x10a   :  { %v166_v29 = vadd.f32 %v165_v28, %v1302_v27  ;;  %v1053_v28 = vld [vmem:[%s1563_s1 + $0x48] sm:$0xff] }
 0x10c   :  { %v194_v30 = vsel %vm141_vm1, %v166_v29, -inf }
 0x10d   :  { %195 = vmax.xlane.f32.xlu1 %v194_v30  ;;  %v1060_v30 = vld [vmem:[%s1564_s2 + $0x48] sm:$0xff] }
 0x117   :  { %v191_v31 = vpop.f32.mrf.mxu3 }
 0x118   :  { %v192_v32 = vadd.f32 %v191_v31, %v1302_v27  ;;  %v1052_v31 = vld [vmem:[%s1563_s1 + $0x40] sm:$0xff] }
 0x11a   :  { %v197_v33 = vsel %vm141_vm1, %v192_v32, -inf }
 0x11b   :  { %198 = vmax.xlane.f32.xlu0 %v197_v33  ;;  %v1119_v33 = vld [vmem:[%s1568_s6 + $0x1] ss:$0 sm:$0xff] }
 0x180   :  { %v196_v43 = vpop.xlane.xlu1 %195 }
 0x181   :  { %v200_v44 = vsub.f32 %v166_v29, %v196_v43  ;;  %v1061_v29 = vld [vmem:[%s1564_s2 + $0x50] sm:$0xff] }
 0x183   :  { %v202_v45 = vmul.f32 1.442695, %v200_v44 }
 0x185   :  { %1127 = vpow2.f32 %v202_v45 }
 0x18b   :  { %v1128_v46 = vpop.eup %1127 }
 0x18c   :  { %v206_v47 = vsel %vm141_vm1, %v1128_v46, 0.0 }
 0x18d   :  { %207 = vadd.xlane.f32.xlu1 %v206_v47 }
 0x18e   :  { %v199_v48 = vpop.xlane.xlu0 %198 }
 0x18f   :  { %v201_v49 = vsub.f32 %v192_v32, %v199_v48  ;;  %v1059_v32 = vld [vmem:[%s1564_s2 + $0x40] sm:$0xff] }
 0x190   :  { %v1120_v48 = vld [vmem:[%s1567_s5 + $0x2] ss:$0 sm:$0xff] }
 0x191   :  { %v204_v50 = vmul.f32 1.442695, %v201_v49 }
 0x193   :  { %1129 = vpow2.f32 %v204_v50 }
 0x199   :  { %v1130_v51 = vpop.eup %1129 }
 0x19a   :  { %v209_v52 = vsel %vm141_vm1, %v1130_v51, 0.0 }
 0x19b   :  { %210 = vadd.xlane.f32.xlu0 %v209_v52 }
 0x200   :  { %v208_v61 = vpop.xlane.xlu1 %207 }
 0x201   :  { %1131 = vrcp.f32 %v208_v61 }
 0x207   :  { %v1132_v62 = vpop.eup %1131 }
 0x208   :  { %v214_v63 = vmul.f32 %v1132_v62, %v1128_v46 }
 0x20a   :  { %1023 = vmatmul.msk.f32.vlgmr.msrb.gmra.mxu3 %vm141_vm1, %v214_v63 }
 0x20b   :  { %516 = vmatpush.msrb.mxu3 %v1055_v24 }
 0x20d   :  { %517 = vmatpush.msrb.mxu3 %v1054_v25 }
 0x20e   :  { %v211_v0 = vpop.xlane.xlu0 %210 }
 0x20f   :  { %1133 = vrcp.f32 %v211_v0  ;;  %518 = vmatpush.msrb.mxu3 %v1053_v28  ;;  %v1069_v0 = vld [vmem:[%s1565_s3 + $0x58] sm:$0xff] }
 0x211   :  { %519 = vmatpush.msrb.mxu3 %v1052_v31 }
 0x212   :  { %1044 = vmatmul.msk.f32.vlgmr.msra.gmra.mxu3 %vm49_vm0, %v1265_v7 }
 0x215   :  { %v1134_v2 = vpop.eup %1133 }
 0x216   :  { %v215_v4 = vmul.f32 %v1134_v2, %v1130_v51  ;;  %v1067_v2 = vld [vmem:[%s1565_s3 + $0x48] sm:$0xff] }
 0x218   :  { %1024 = vmatmul.msk.f32.vlgmr.msra.gmra.mxu0 %vm141_vm1, %v215_v4 }
 0x219   :  { %1048 = vmatpush.xpose.msk.msra.mxu0 %vm141_vm1, %v328_v3  ;;  %v1066_v3 = vld [vmem:[%s1565_s3 + $0x40] sm:$0xff] }
 0x21a   :  { %1045 = vmatmul.msk.f32.gmra.mxu3 %vm49_vm0, %v1277_v9 }
 0x220   :  { %1047 = vmatmul.msk.f32.vlgmr.msrb.gmra.mxu0 %vm141_vm1, %v292_v8 }
 0x221   :  { %549 = vmatpush.msrb.mxu0 %v1062_v26 }
 0x222   :  { %1057 = vmatmul.msk.f32.vlgmr.msrb.gmra.mxu3 %vm49_vm0, %v1265_v7 }
 0x223   :  { %550 = vmatpush.msrb.mxu0 %v1061_v29 }
 0x225   :  { %551 = vmatpush.msrb.mxu0 %v1060_v30 }
 0x227   :  { %552 = vmatpush.msrb.mxu0 %v1059_v32 }
 0x228   :  { %1049 = vmatmul.msk.f32.vlgmr.msra.gmra.mxu0 %vm141_vm1, %v295_v11 }
 0x22a   :  { %1058 = vmatmul.msk.f32.gmra.mxu3 %vm49_vm0, %v1277_v9 }
 0x230   :  { %1064 = vmatmul.msk.f32.vlgmr.msrb.gmra.mxu0 %vm49_vm0, %v1265_v7 }
 0x238   :  { %1065 = vmatmul.msk.f32.gmra.mxu0 %vm49_vm0, %v1277_v9 }
 0x28d   :  { %v236_v15 = vpop.f32.mrf.mxu3 }
 0x28e   :  { %262 = vst.msk [vmem:[#allocation2] sm:$0xff] %vm141_vm1, %v236_v15  ;;  %v1087_v15 = vld [vmem:[%s1564_s2 + $0x68] sm:$0xff] }
 0x295   :  { %v259_v17 = vpop.f32.mrf.mxu0  ;;  %v357_v35 = vpop.f32.mrf.mxu3 }
 0x296   :  { %263 = vst.msk [vmem:[#allocation2 + $0x8] sm:$0xff] %vm141_vm1, %v259_v17  ;;  %v358_v37 = vadd.f32 %v1119_v33, %v357_v35  ;;  %v1086_v17 = vld [vmem:[%s1564_s2 + $0x60] sm:$0xff] }
 0x298   :  { %455 = vmatpush.msra.mxu1 %v358_v37 }
 0x29a   :  { %582 = vmatpush.msrb.mxu1 %v1069_v0 }
 0x29c   :  { %583 = vmatpush.msrb.mxu1 %v1068_v1 }
 0x29d   :  { %v386_v18 = vpop.f32.mrf.mxu0  ;;  %v360_v40 = vpop.f32.mrf.mxu3 }
 0x29e   :  { %v387_v19 = vadd.f32 %v386_v18, %v1302_v27  ;;  %v361_v42 = vadd.f32 %v1119_v33, %v360_v40  ;;  %584 = vmatpush.msrb.mxu1 %v1067_v2  ;;  %v1081_v18 = vld [vmem:[%s1563_s1 + $0x70] sm:$0xff] }
 0x2a0   :  { %v415_v20 = vsel %vm141_vm1, %v387_v19, -inf  ;;  %478 = vmatpush.msra.mxu2 %v361_v42  ;;  %585 = vmatpush.msrb.mxu1 %v1066_v3 }
 0x2a1   :  { %416 = vmax.xlane.f32.xlu0 %v415_v20 }
 0x2a5   :  { %v412_v21 = vpop.f32.mrf.mxu0  ;;  %v521_v59 = vpop.f32.mrf.mxu3 }
 0x2a6   :  { %v413_v22 = vadd.f32 %v412_v21, %v1302_v27  ;;  %v522_v61 = vadd.f32 %v1121_v60, %v521_v59  ;;  %v1079_v21 = vld [vmem:[%s1563_s1 + $0x60] sm:$0xff] }
 0x2a8   :  { %v418_v23 = vsel %vm141_vm1, %v413_v22, -inf }
 0x2a9   :  { %419 = vmax.xlane.f32.xlu2 %v418_v23 }
 0x2ad   :  { %v554_v49 = vpop.f32.mrf.mxu0  ;;  %v524_v62 = vpop.f32.mrf.mxu3 }
 0x2ae   :  { %v555_v50 = vadd.f32 %v1120_v48, %v554_v49  ;;  %v525_v63 = vadd.f32 %v1121_v60, %v524_v62  ;;  %v1095_v62 = vld [vmem:[%s1565_s3 + $0x70] sm:$0xff] }
 0x2b0   :  { %1073 = vmatpush.xpose.msk.msrb.mxu2 %vm141_vm1, %v555_v50  ;;  %v1124_v50 = vld [vmem:[%s1566_s4 + $0x3] ss:$0 sm:$0xff] }
 0x2b5   :  { %v557_v55 = vpop.f32.mrf.mxu0 }
 0x2b6   :  { %v558_v57 = vadd.f32 %v1120_v48, %v557_v55 }
 0x314   :  { %v417_v34 = vpop.xlane.xlu0 %416 }
 0x315   :  { %v421_v36 = vsub.f32 %v387_v19, %v417_v34  ;;  %v1080_v19 = vld [vmem:[%s1563_s1 + $0x68] sm:$0xff] }
 0x317   :  { %v423_v38 = vmul.f32 1.442695, %v421_v36 }
 0x319   :  { %1135 = vpow2.f32 %v423_v38  ;;  %v1123_v38 = vld [vmem:[%s1567_s5 + $0x3] ss:$0 sm:$0xff]  ;;  %s1001_s5 = sshll.u32 %s1571_s9, 4  ;;  %s1002_s5 = int_to_ptr.hbm [resolvable:$true] %s1001_s5 }
 0x31c   :  { %v420_v39 = vpop.xlane.xlu2 %419 }
 0x31d   :  { %v422_v41 = vsub.f32 %v413_v22, %v420_v39  ;;  %v1122_v22 = vld [vmem:[%s1568_s6 + $0x2] ss:$0 sm:$0xff] }
 0x31f   :  { %v1136_v43 = vpop.eup %1135  ;;  %v425_v44 = vmul.f32 1.442695, %v422_v41 }
 0x320   :  { %v427_v45 = vsel %vm141_vm1, %v1136_v43, 0.0 }
 0x321   :  { %1137 = vpow2.f32 %v425_v44  ;;  %428 = vadd.xlane.f32.xlu1 %v427_v45 }
 0x327   :  { %v1138_v46 = vpop.eup %1137 }
 0x328   :  { %v430_v47 = vsel %vm141_vm1, %v1138_v46, 0.0 }
 0x329   :  { %431 = vadd.xlane.f32.xlu2 %v430_v47 }
 0x394   :  { %v429_v51 = vpop.xlane.xlu1 %428 }
 0x395   :  { %1139 = vrcp.f32 %v429_v51 }
 0x39b   :  { %v1140_v52 = vpop.eup %1139 }
 0x39c   :  { %v435_v53 = vmul.f32 %v1140_v52, %v1136_v43  ;;  %v432_v54 = vpop.xlane.xlu2 %431 }
 0x39d   :  { %1141 = vrcp.f32 %v432_v54 }
 0x39e   :  { %1050 = vmatmul.msk.f32.vlgmr.msra.gmra.mxu1 %vm141_vm1, %v435_v53 }
 0x39f   :  { %746 = vmatpush.msra.mxu1 %v1082_v16 }
 0x3a1   :  { %747 = vmatpush.msra.mxu1 %v1081_v18 }
 0x3a3   :  { %v1142_v56 = vpop.eup %1141  ;;  %748 = vmatpush.msra.mxu1 %v1080_v19 }
 0x3a4   :  { %v436_v58 = vmul.f32 %v1142_v56, %v1138_v46 }
 0x3a5   :  { %749 = vmatpush.msra.mxu1 %v1079_v21 }
 0x3a6   :  { %1051 = vmatmul.msk.f32.vlgmr.msra.gmra.mxu2 %vm141_vm1, %v436_v58  ;;  %1071 = vmatmul.msk.f32.vlgmr.msrb.gmra.mxu1 %vm49_vm0, %v1265_v7 }
 0x3a7   :  { %1075 = vmatpush.xpose.msk.msra.mxu2 %vm141_vm1, %v558_v57 }
 0x3ae   :  { %1074 = vmatmul.msk.f32.vlgmr.msrb.gmra.mxu2 %vm141_vm1, %v522_v61  ;;  %1072 = vmatmul.msk.f32.gmra.mxu1 %vm49_vm0, %v1277_v9  ;;  %v1096_v61 = vld [vmem:[%s1565_s3 + $0x78] sm:$0xff] }
 0x3af   :  { %779 = vmatpush.msrb.mxu2 %v1089_v13 }
 0x3b1   :  { %780 = vmatpush.msrb.mxu2 %v1088_v14 }
 0x3b3   :  { %781 = vmatpush.msrb.mxu2 %v1087_v15 }
 0x3b5   :  { %782 = vmatpush.msrb.mxu2 %v1086_v17 }
 0x3b6   :  { %1076 = vmatmul.msk.f32.vlgmr.msra.gmra.mxu2 %vm141_vm1, %v525_v63  ;;  %1084 = vmatmul.msk.f32.vlgmr.msra.gmra.mxu1 %vm49_vm0, %v1265_v7  ;;  %v1094_v63 = vld [vmem:[%s1565_s3 + $0x68] sm:$0xff] }
 0x3be   :  { %1091 = vmatmul.msk.f32.vlgmr.msrb.gmra.mxu2 %vm49_vm0, %v1265_v7  ;;  %1085 = vmatmul.msk.f32.gmra.mxu1 %vm49_vm0, %v1277_v9 }
 0x3c6   :  { %1092 = vmatmul.msk.f32.gmra.mxu2 %vm49_vm0, %v1277_v9 }
 0x41b   :  { %v1480_v20 = vpop.f32.mrf.mxu1 }
 0x423   :  { %v587_v23 = vpop.f32.mrf.mxu1 }
 0x424   :  { %v588_v24 = vadd.f32 %v1122_v22, %v587_v23 }
 0x426   :  { %685 = vmatpush.msra.mxu3 %v588_v24 }
 0x428   :  { %812 = vmatpush.msrb.mxu3 %v1096_v61 }
 0x429   :  { %v1449_v4 = vpop.f32.mrf.mxu2 }
 0x42a   :  { %813 = vmatpush.msrb.mxu3 %v1095_v62 }
 0x42b   :  { %v590_v28 = vpop.f32.mrf.mxu1 }
 0x42c   :  { %v591_v30 = vadd.f32 %v1122_v22, %v590_v28  ;;  %814 = vmatpush.msrb.mxu3 %v1094_v63 }
 0x42e   :  { %708 = vmatpush.msra.mxu0 %v591_v30  ;;  %v958_v30 = vld [vmem:[%s1569_s7 + $0x10] sm:$0xff] }
 0x431   :  { %v616_v5 = vpop.f32.mrf.mxu2 }
 0x432   :  { %v617_v6 = vadd.f32 %v616_v5, %v1302_v27 }
 0x433   :  { %v751_v49 = vpop.f32.mrf.mxu1 }
 0x434   :  { %v645_v8 = vsel %vm141_vm1, %v617_v6, -inf  ;;  %v752_v51 = vadd.f32 %v1124_v50, %v751_v49 }
 0x435   :  { %646 = vmax.xlane.f32.xlu1 %v645_v8 }
 0x439   :  { %v642_v10 = vpop.f32.mrf.mxu2 }
 0x43a   :  { %v643_v11 = vadd.f32 %v642_v10, %v1302_v27 }
 0x43b   :  { %v754_v52 = vpop.f32.mrf.mxu1 }
 0x43c   :  { %v648_v12 = vsel %vm141_vm1, %v643_v11, -inf  ;;  %v755_v53 = vadd.f32 %v1124_v50, %v754_v52 }
 0x43d   :  { %649 = vmax.xlane.f32.xlu2 %v648_v12  ;;  %v1125_v12 = vld [vmem:[%s1568_s6 + $0x3] ss:$0 sm:$0xff] }
 0x441   :  { %v784_v39 = vpop.f32.mrf.mxu2 }
 0x442   :  { %v785_v40 = vadd.f32 %v1123_v38, %v784_v39 }
 0x444   :  { %1100 = vmatpush.xpose.msk.msrb.mxu0 %vm141_vm1, %v785_v40 }
 0x449   :  { %v787_v45 = vpop.f32.mrf.mxu2 }
 0x44a   :  { %v788_v47 = vadd.f32 %v1123_v38, %v787_v45 }
 0x4a8   :  { %v647_v25 = vpop.xlane.xlu1 %646 }
 0x4a9   :  { %v651_v26 = vsub.f32 %v617_v6, %v647_v25 }
 0x4ab   :  { %v653_v29 = vmul.f32 1.442695, %v651_v26 }
 0x4ad   :  { %1143 = vpow2.f32 %v653_v29 }
 0x4b0   :  { %v650_v31 = vpop.xlane.xlu2 %649 }
 0x4b1   :  { %v652_v32 = vsub.f32 %v643_v11, %v650_v31  ;;  %v957_v31 = vld [vmem:[%s1569_s7 + $0x8] sm:$0xff] }
 0x4b3   :  { %v1144_v33 = vpop.eup %1143  ;;  %v655_v34 = vmul.f32 1.442695, %v652_v32  ;;  %v956_v32 = vld [vmem:[%s1569_s7] sm:$0xff] }
 0x4b4   :  { %v657_v35 = vsel %vm141_vm1, %v1144_v33, 0.0 }
 0x4b5   :  { %1145 = vpow2.f32 %v655_v34  ;;  %658 = vadd.xlane.f32.xlu2 %v657_v35 }
 0x4bb   :  { %v1146_v36 = vpop.eup %1145 }
 0x4bc   :  { %v660_v37 = vsel %vm141_vm1, %v1146_v36, 0.0 }
 0x4bd   :  { %661 = vadd.xlane.f32.xlu0 %v660_v37  ;;  %v1126_v37 = vld [vmem:[%s1570_s8] ss:$0 sm:$0xff] }
 0x528   :  { %v659_v41 = vpop.xlane.xlu2 %658 }
 0x529   :  { %1147 = vrcp.f32 %v659_v41 }
 0x52f   :  { %v1148_v42 = vpop.eup %1147 }
 0x530   :  { %v665_v43 = vmul.f32 %v1148_v42, %v1144_v33  ;;  %v662_v44 = vpop.xlane.xlu0 %661 }
 0x531   :  { %1149 = vrcp.f32 %v662_v44 }
 0x532   :  { %1077 = vmatmul.msk.f32.vlgmr.msra.gmra.mxu3 %vm141_vm1, %v665_v43 }
 0x537   :  { %v1150_v46 = vpop.eup %1149 }
 0x538   :  { %v666_v48 = vmul.f32 %v1150_v46, %v1146_v36 }
 0x53a   :  { %1078 = vmatmul.msk.f32.vlgmr.msra.gmra.mxu0 %vm141_vm1, %v666_v48 }
 0x53b   :  { %1102 = vmatpush.xpose.msk.msra.mxu0 %vm141_vm1, %v788_v47 }
 0x542   :  { %1101 = vmatmul.msk.f32.vlgmr.msrb.gmra.mxu0 %vm141_vm1, %v752_v51 }
 0x54a   :  { %1103 = vmatmul.msk.f32.vlgmr.msra.gmra.mxu0 %vm141_vm1, %v755_v53 }
 0x5b5   :  { %v687_v11 = vpop.f32.mrf.mxu3 }
 0x5b7   :  { %v710_v54 = vpop.f32.mrf.mxu0 }
 0x5bf   :  { %v846_v55 = vpop.f32.mrf.mxu0 }
 0x5c0   :  { %v847_v56 = vadd.f32 %v846_v55, %v1302_v27 }
 0x5c2   :  { %v875_v57 = vsel %vm141_vm1, %v847_v56, -inf }
 0x5c3   :  { %876 = vmax.xlane.f32.xlu0 %v875_v57 }
 0x5c7   :  { %v872_v58 = vpop.f32.mrf.mxu0 }
 0x5c8   :  { %v873_v59 = vadd.f32 %v872_v58, %v1302_v27  ;;  %v1093_v27 = vld [vmem:[%s1565_s3 + $0x60] sm:$0xff] }
 0x5c9   :  { %815 = vmatpush.msrb.mxu3 %v1093_v27 }
 0x5ca   :  { %v878_v60 = vsel %vm141_vm1, %v873_v59, -inf  ;;  %1098 = vmatmul.msk.f32.vlgmr.msrb.gmra.mxu3 %vm49_vm0, %v1265_v7 }
 0x5cb   :  { %879 = vmax.xlane.f32.xlu1 %v878_v60 }
 0x5d2   :  { %1099 = vmatmul.msk.f32.gmra.mxu3 %vm49_vm0, %v1277_v9 }
 0x5e4   :  { %485 = vrot.lane.b32.xlu1 %v1480_v20, %s1186_s17 }
 0x5ec   :  { %717 = vrot.lane.b32.xlu1 %v710_v54, %s1187_s18 }
 0x636   :  { %v877_v0 = vpop.xlane.xlu0 %876 }
 0x637   :  { %v881_v1 = vsub.f32 %v847_v56, %v877_v0 }
 0x639   :  { %v883_v2 = vmul.f32 1.442695, %v881_v1 }
 0x63b   :  { %1151 = vpow2.f32 %v883_v2 }
 0x63e   :  { %v880_v3 = vpop.xlane.xlu1 %879 }
 0x63f   :  { %v882_v5 = vsub.f32 %v873_v59, %v880_v3 }
 0x641   :  { %v1152_v6 = vpop.eup %1151  ;;  %v885_v8 = vmul.f32 1.442695, %v882_v5 }
 0x642   :  { %v887_v10 = vsel %vm141_vm1, %v1152_v6, 0.0 }
 0x643   :  { %1153 = vpow2.f32 %v885_v8  ;;  %888 = vadd.xlane.f32.xlu2 %v887_v10 }
 0x649   :  { %v1154_v7 = vpop.eup %1153 }
 0x64a   :  { %v890_v9 = vsel %vm141_vm1, %v1154_v7, 0.0 }
 0x64b   :  { %891 = vadd.xlane.f32.xlu0 %v890_v9 }
 0x64d   :  { %v817_v14 = vpop.f32.mrf.mxu3 }
 0x64e   :  { %v818_v15 = vadd.f32 %v1125_v12, %v817_v14 }
 0x650   :  { %915 = vmatpush.msrb.mxu1 %v818_v15 }
 0x655   :  { %v820_v16 = vpop.f32.mrf.mxu3 }
 0x656   :  { %v486_v13 = vpop.permute.xlu1 %485  ;;  %v821_v17 = vadd.f32 %v1125_v12, %v820_v16 }
 0x657   :  { %492 = vst.msk [vmem:[#allocation2] sm:$0xff] %vm491_vm3, %v486_v13 }
 0x658   :  { %938 = vmatpush.msra.mxu2 %v821_v17 }
 0x65b   :  { %715 = vrot.lane.b32.xlu2 %v687_v11, %s1187_s18 }
 0x65e   :  { %v718_v26 = vpop.permute.xlu1 %717 }
 0x663   :  { %487 = vrot.lane.b32.xlu2 %v1449_v4, %s1186_s17  ;;  %v959_v4 = vld [vmem:[%s1569_s7 + $0x18] sm:$0xff]  ;;  %s1189_s7 = smov [#allocation3]  }
 0x664   :  { %982 = vmatpush.msra.mxu3 %v959_v4  ;;  %s999_s29 = sshll.u32 %s1189_s7, 4  ;;  %s1000_s29 = int_to_ptr.vmem [resolvable:$true] %s999_s29 }
 0x666   :  { %983 = vmatpush.msra.mxu3 %v958_v30 }
 0x668   :  { %984 = vmatpush.msra.mxu3 %v957_v31 }
 0x66a   :  { %985 = vmatpush.msra.mxu3 %v956_v32 }
 0x6b6   :  { %v889_v18 = vpop.xlane.xlu2 %888 }
 0x6b7   :  { %1155 = vrcp.f32 %v889_v18 }
 0x6bd   :  { %v1156_v19 = vpop.eup %1155 }
 0x6be   :  { %v895_v20 = vmul.f32 %v1156_v19, %v1152_v6  ;;  %v716_v21 = vpop.permute.xlu2 %715  ;;  %v892_v22 = vpop.xlane.xlu0 %891 }
 0x6bf   :  { %722 = vst.msk [vmem:[#allocation2] sm:$0xff] %vm721_vm4, %v716_v21  ;;  %1157 = vrcp.f32 %v892_v22 }
 0x6c0   :  { %1104 = vmatmul.msk.f32.vlgmr.msrb.gmra.mxu1 %vm141_vm1, %v895_v20 }
 0x6c5   :  { %v1158_v23 = vpop.eup %1157 }
 0x6c6   :  { %v896_v24 = vmul.f32 %v1158_v23, %v1154_v7  ;;  %v488_v25 = vpop.permute.xlu2 %487 }
 0x6c7   :  { %493 = vst.msk [vmem:[#allocation2 + $0x8] sm:$0xff] %vm491_vm3, %v488_v25 }
 0x6c8   :  { %723 = vst.msk [vmem:[#allocation2 + $0x8] sm:$0xff] %vm721_vm4, %v718_v26  ;;  %1105 = vmatmul.msk.f32.vlgmr.msra.gmra.mxu2 %vm141_vm1, %v896_v24 }
 0x73d   :  { %v917_v28 = vpop.f32.mrf.mxu1 }
 0x73e   :  { %945 = vrot.lane.b32.xlu0 %v917_v28, %s1188_s21 }
 0x74b   :  { %v940_v29 = vpop.f32.mrf.mxu2 }
 0x74c   :  { %947 = vrot.lane.b32.xlu0 %v940_v29, %s1188_s21 }
 0x7b0   :  { %v946_v33 = vpop.permute.xlu0 %945 }
 0x7b1   :  { %952 = vst.msk [vmem:[#allocation2] sm:$0xff] %vm951_vm5, %v946_v33 }
 0x7b8   :  { %v954_v34 = vld [vmem:[#allocation2] sm:$0xff] }
 0x7b9   :  { %1106 = vmatmul.msk.f32.vlgmr.msra.gmra.mxu3 %vm49_vm0, %v954_v34 }
 0x7be   :  { %v948_v35 = vpop.permute.xlu0 %947 }
 0x7bf   :  { %953 = vst.msk [vmem:[#allocation2 + $0x8] sm:$0xff] %vm951_vm5, %v948_v35 }
 0x7c6   :  { %v955_v36 = vld [vmem:[#allocation2 + $0x8] sm:$0xff] }
 0x7c7   :  { %1107 = vmatmul.msk.f32.gmra.mxu3 %vm49_vm0, %v955_v36 }
 0x83c   :  { %v987_v38 = vpop.f32.mrf.mxu3 }
 0x83d   :  { %v988_v39 = vadd.f32 %v1126_v37, %v987_v38 }
 0x83f   :  { %993 = vst [vmem:[#allocation3] sm:$0xff] %v988_v39 }
 0x84a   :  { %v990_v40 = vpop.f32.mrf.mxu3 }
 0x84b   :  { %v991_v41 = vadd.f32 %v1126_v37, %v990_v40 }
 0x84d   :  { %994 = vst [vmem:[#allocation3 + $0x8] sm:$0xff] %v991_v41 }
 0x84e   :  { %1007 = dma.vmem_to_hbm [thread:$0]  %s1000_s29, 256, %s1002_s5, [#allocation4], %s1190_s10, %s1190_s10, %s1186_s17  }
 0x84f   :  { %1183 = dma.done.wait [#allocation4], 256  }
 0x850   :  { %1184 = vsyncadd [#allocation4], 4294967040 }
 0x851   :  { %1012 = vsyncpa [#allocation4], 1 }

</bundles_post_ra>
